<compile_context>
chip_gen: v7x
topology: tpu7x:2x2x1
jax: 0.10.0
libtpu: 0.0.40
codegen_flags: <defaults>
</compile_context>

<pallas_src>
import functools

import jax
import jax.numpy as jnp
import numpy as np
from jax import lax
from jax.experimental import pallas as pl
from jax.experimental.pallas import tpu as pltpu

ASC_CONFIG = {
    "max_rank": 16,
    "min_rank": 2,
}


def _round_up(v, m):
    return (v + m - 1) // m * m


def _rank_pad(compute_dtype):
    """LoRA rank padded to one native sublane tile for the compute dtype."""
    itemsize = jnp.dtype(compute_dtype).itemsize
    if itemsize == 1:
        return 32
    if itemsize == 2:
        return 16
    return 8


def _tile_sizes(M, N, K, tm, tn, tk):
    """Effective tile sizes, clamped for small problems (last-two block dims
    must be divisible by (8, 128) or equal the padded full extent)."""
    tm_e = min(tm, _round_up(M, 8))
    tn_e = min(tn, _round_up(N, 128))
    tk_e = min(tk, _round_up(K, 128))
    return tm_e, tn_e, tk_e


def _adaptive_lora_kernel(x_ref, wt_ref, xa_ref, bt_ref, o_ref, acc_ref):
    """One (tm, tn) output tile, accumulated over the K grid axis.

    x_ref  : (tm, tk)   activation tile x[i, k]
    wt_ref : (tk, tn)   base weight pre-transposed to (in, out) -> W.T[k, j]
    xa_ref : (tm, RP)   xa = x @ lora_A.T (precomputed in the wrapper)
    bt_ref : (RP, tn)   lora_B pre-transposed to (rank, out)
    o_ref  : (tm, tn)   output tile (same block for every k)
    acc_ref: (tm, tn)   f32 accumulator scratch
    """
    k = pl.program_id(2)
    nk = pl.num_programs(2)

    # Canonical (tm,tk)@(tk,tn) MXU contraction — no in-kernel relayout.
    partial = jnp.dot(x_ref[...], wt_ref[...], preferred_element_type=jnp.float32)

    @pl.when(k == 0)
    def _():
        acc_ref[...] = partial          # direct write: no zero-fill + add

    @pl.when(k > 0)
    def _():
        acc_ref[...] += partial

    @pl.when(k == nk - 1)
    def _():
        # Rank-RP LoRA correction: one small MXU push per output tile.
        lora = jnp.dot(xa_ref[...], bt_ref[...], preferred_element_type=jnp.float32)
        o_ref[...] = (acc_ref[...] + lora).astype(o_ref.dtype)


def prepare_adaptive_lora_params(weight, lora_b, *, tn=512, tk=512,
                                 compute_dtype=jnp.bfloat16):
    """One-time (init-time) weight prep, hoisted out of the forward hot path:
    cast to the MXU compute dtype, transpose to the canonical (K, N)/(RP, N)
    layouts and zero-pad to tile multiples."""
    N, K = weight.shape
    r = lora_b.shape[1]
    rp = _rank_pad(compute_dtype)
    _, tn_e, tk_e = _tile_sizes(8, N, K, 8, tn, tk)   # M/tm irrelevant here
    Np, Kp = _round_up(N, tn_e), _round_up(K, tk_e)
    wt = weight.astype(compute_dtype).T               # (K, N), no HBM transpose per call
    bt = lora_b.astype(compute_dtype).T               # (r, N), lane-dense factor
    if wt.shape != (Kp, Np):
        wt = jnp.pad(wt, ((0, Kp - K), (0, Np - N)))
    if bt.shape != (rp, Np):
        bt = jnp.pad(bt, ((0, rp - r), (0, Np - N)))
    return wt, bt


@functools.partial(jax.jit,
                   static_argnames=("out_features", "tm", "tn", "tk", "compute_dtype"))
def adaptive_lora_linear_fwd(x, w_t, lora_a, b_t, *, out_features,
                             tm=512, tn=512, tk=512,
                             compute_dtype=jnp.bfloat16):
    """y = x @ W.T + (x @ lora_A.T) @ lora_B.T

    x      : (M, K)   activations (output keeps this dtype)
    w_t    : (Kp, Np) pre-cast / pre-transposed / pre-padded base weight
    lora_a : (r, K)   raw LoRA A factor (PyTorch layout)
    b_t    : (RP, Np) pre-cast / pre-transposed / pre-padded LoRA B factor
    """
    out_dtype = x.dtype
    M, K = x.shape
    Kp, Np = w_t.shape
    N = out_features
    r = lora_a.shape[0]
    rp = _rank_pad(compute_dtype)

    # effective_rank = min_rank + int((max_rank - min_rank) * importance) is
    # always >= min_rank, and lora_A has exactly min_rank rows, so the PyTorch
    # [:effective_rank] slice clamps to the full factors -> resolved
    # statically.  Guard the assumption so `importance` can never be silently
    # ignored if the module ever allocates max_rank rows.
    assert r == ASC_CONFIG["min_rank"], (
        "static effective-rank clamp requires lora_A rows == min_rank")
    assert lora_a.shape[1] == K
    assert b_t.shape[0] == rp, "b_t was prepared with a different compute_dtype"

    tm_e, tn_e, tk_e = _tile_sizes(M, N, K, tm, tn, tk)
    Mp = _round_up(M, tm_e)
    assert Kp == _round_up(K, tk_e) and Np == _round_up(N, tn_e), (
        "w_t/b_t were prepared with different tile sizes")

    # Hoisted low-rank projection (<0.5% of total FLOPs).  Doing it here (a)
    # removes the per-k lora_A DMA and the conditional narrow MXU pushes from
    # the kernel and (b) removes the cross-j scratch carry, so the j axis can
    # be 'parallel' (both v7x TensorCores used even when M/tm == 1).
    xa = lax.dot_general(x, lora_a.astype(x.dtype),
                         dimension_numbers=(((1,), (1,)), ((), ())),
                         preferred_element_type=jnp.float32)
    xa = xa.astype(compute_dtype)
    if xa.shape != (Mp, rp):
        xa = jnp.pad(xa, ((0, Mp - M), (0, rp - r)))

    xc = x.astype(compute_dtype)
    if xc.shape != (Mp, Kp):
        xc = jnp.pad(xc, ((0, Mp - M), (0, Kp - K)))

    grid = (Mp // tm_e, Np // tn_e, Kp // tk_e)

    out = pl.pallas_call(
        _adaptive_lora_kernel,
        out_shape=jax.ShapeDtypeStruct((Mp, Np), out_dtype),
        grid_spec=pltpu.PrefetchScalarGridSpec(
            num_scalar_prefetch=0,
            grid=grid,
            in_specs=[
                pl.BlockSpec((tm_e, tk_e), lambda i, j, k: (i, k)),  # x
                pl.BlockSpec((tk_e, tn_e), lambda i, j, k: (k, j)),  # W.T (in,out)
                pl.BlockSpec((tm_e, rp), lambda i, j, k: (i, 0)),    # xa
                pl.BlockSpec((rp, tn_e), lambda i, j, k: (0, j)),    # lora_B.T
            ],
            out_specs=pl.BlockSpec((tm_e, tn_e), lambda i, j, k: (i, j)),
            scratch_shapes=[
                pltpu.VMEM((tm_e, tn_e), jnp.float32),  # f32 accumulator
            ],
        ),
        compiler_params=pltpu.CompilerParams(
            # i and j are independent output tiles (xa is a plain input now),
            # so both shard across TensorCores on v7x; k carries the
            # accumulator and stays sequential.
            dimension_semantics=("parallel", "parallel", "arbitrary"),
            vmem_limit_bytes=32 * 1024 * 1024,
        ),
    )(xc, w_t, xa, b_t)

    if (Mp, Np) != (M, N):
        out = out[:M, :N]
    return out


class AdaptiveLoRALinearParams:
    """Deterministic parameter construction mirroring the PyTorch __init__,
    plus one-time weight preparation for the kernel hot path."""

    def __init__(self, in_features, out_features, key, *,
                 compute_dtype=jnp.bfloat16, tm=512, tn=512, tk=512):
        self.in_features = in_features
        self.out_features = out_features
        self.compute_dtype = compute_dtype
        self.tm, self.tn, self.tk = tm, tn, tk

        k_w, k_imp = jax.random.split(key, 2)
        # nn.Linear default init: U(-1/sqrt(in), 1/sqrt(in))
        bound = 1.0 / np.sqrt(in_features)
        self.weight = jax.random.uniform(
            k_w, (out_features, in_features), jnp.float32, -bound, bound)
        # importance ~ torch.rand(1)  (kept for fidelity; see the static
        # effective-rank clamp in adaptive_lora_linear_fwd)
        self.importance = jax.random.uniform(k_imp, (1,), jnp.float32)
        self.rank = ASC_CONFIG["min_rank"]
        self.lora_A = jnp.zeros((self.rank, in_features), jnp.float32)
        self.lora_B = jnp.zeros((out_features, self.rank), jnp.float32)
        self._prepare()

    def _prepare(self):
        self.w_t, self.b_t = prepare_adaptive_lora_params(
            self.weight, self.lora_B, tn=self.tn, tk=self.tk,
            compute_dtype=self.compute_dtype)

    def set_lora(self, lora_A, lora_B):
        self.lora_A, self.lora_B = lora_A, lora_B
        self._prepare()

    def forward(self, x):
        return adaptive_lora_linear_fwd(
            x, self.w_t, self.lora_A, self.b_t,
            out_features=self.out_features,
            tm=self.tm, tn=self.tn, tk=self.tk,
            compute_dtype=self.compute_dtype)


def _reference(x, module):
    return (x @ module.weight.T
            + x @ module.lora_A.T @ module.lora_B.T)


if __name__ == "__main__":
    key = jax.random.PRNGKey(0)
    k_param, k_x, k_a, k_b = jax.random.split(key, 4)

    # --- 1) small shape, default bf16 compute (single grid step, padding) ---
    batch, in_features, out_features = 16, 32, 48
    module = AdaptiveLoRALinearParams(in_features, out_features, k_param)
    # The module initializes the LoRA factors to zeros; give them nonzero
    # values so the fused low-rank path is numerically exercised.
    module.set_lora(
        0.1 * jax.random.normal(k_a, (module.rank, in_features), jnp.float32),
        0.1 * jax.random.normal(k_b, (out_features, module.rank), jnp.float32))
    x = jax.random.normal(k_x, (batch, in_features), jnp.float32)
    ref = _reference(x, module)

    y = jax.block_until_ready(module.forward(x))
    np.testing.assert_allclose(np.asarray(y), np.asarray(ref),
                               rtol=2e-2, atol=2e-2)

    # --- 2) same shape, f32 compute path for a tight bit-accuracy check -----
    module32 = AdaptiveLoRALinearParams(in_features, out_features, k_param,
                                        compute_dtype=jnp.float32)
    module32.set_lora(module.lora_A, module.lora_B)
    y32 = jax.block_until_ready(module32.forward(x))
    np.testing.assert_allclose(np.asarray(y32), np.asarray(ref),
                               rtol=1e-4, atol=1e-4)

    # --- 3) multi-tile grid (2 j-steps x 2 k-steps), bf16 accumulation ------
    M3, K3, N3 = 64, 1024, 1024
    module3 = AdaptiveLoRALinearParams(K3, N3, k_param)
    module3.set_lora(
        0.05 * jax.random.normal(k_a, (module3.rank, K3), jnp.float32),
        0.05 * jax.random.normal(k_b, (N3, module3.rank), jnp.float32))
    x3 = jax.random.normal(k_x, (M3, K3), jnp.float32)
    y3 = jax.block_until_ready(module3.forward(x3))
    np.testing.assert_allclose(np.asarray(y3), np.asarray(_reference(x3, module3)),
                               rtol=2e-2, atol=2e-2)

    print("KERNEL_OK")
</pallas_src>

<mosaic_0001>
module attributes {stable_mosaic.version = 11 : i64} {
  func.func @_adaptive_lora_kernel(%arg0: i32, %arg1: i32, %arg2: i32, %arg3: memref<16x128xbf16, #tpu.memory_space<vmem>>, %arg4: memref<128x128xbf16, #tpu.memory_space<vmem>>, %arg5: memref<16x16xbf16, #tpu.memory_space<vmem>>, %arg6: memref<16x128xbf16, #tpu.memory_space<vmem>>, %arg7: memref<16x128xf32, #tpu.memory_space<vmem>>, %arg8: memref<16x128xf32, #tpu.memory_space<vmem>>) attributes {dimension_semantics = [#tpu.dimension_semantics<parallel>, #tpu.dimension_semantics<parallel>, #tpu.dimension_semantics<arbitrary>], iteration_bounds = array<i64: 1, 1, 1>, scalar_prefetch = 0 : i64, scratch_operands = 1 : i64, tpu.core_type = #tpu.core_type<tc>, window_params = [{transform_indices = @transform_0, window_bounds = array<i64: 16, 128>}, {transform_indices = @transform_1, window_bounds = array<i64: 128, 128>}, {transform_indices = @transform_2, window_bounds = array<i64: 16, 16>}, {transform_indices = @transform_3, window_bounds = array<i64: 16, 128>}, {transform_indices = @transform_4, window_bounds = array<i64: 16, 128>}]} {
    %c0 = arith.constant 0 : index
    %c0_0 = arith.constant 0 : index
    %0 = vector.load %arg3[%c0, %c0_0] : memref<16x128xbf16, #tpu.memory_space<vmem>>, vector<16x128xbf16>
    %c0_1 = arith.constant 0 : index
    %c0_2 = arith.constant 0 : index
    %1 = vector.load %arg4[%c0_1, %c0_2] : memref<128x128xbf16, #tpu.memory_space<vmem>>, vector<128x128xbf16>
    %cst = arith.constant dense<0.000000e+00> : vector<16x128xf32>
    %2 = tpu.matmul %0, %1, %cst {dimension_numbers = #tpu.dot_dimension_numbers<[1], [0], [0], [1], [0, 0, 1, 1], [], []>} : vector<16x128xbf16>, vector<128x128xbf16>, vector<16x128xf32> -> vector<16x128xf32>
    %c0_i32 = arith.constant 0 : i32
    %3 = arith.cmpi eq, %arg2, %c0_i32 : i32
    %4 = arith.extui %3 : i1 to i32
    %c0_i32_3 = arith.constant 0 : i32
    %5 = arith.cmpi ne, %4, %c0_i32_3 : i32
    scf.if %5 {
      %c0_8 = arith.constant 0 : index
      %c0_9 = arith.constant 0 : index
      %12 = vector.load %arg8[%c0_8, %c0_9] : memref<16x128xf32, #tpu.memory_space<vmem>>, vector<16x128xf32>
      tpu.vector_store %arg8[%c0_8, %c0_9], %2 {strides = array<i32>} : memref<16x128xf32, #tpu.memory_space<vmem>>, vector<16x128xf32>,
    } else {
    }
    %c0_i32_4 = arith.constant 0 : i32
    %6 = arith.cmpi sgt, %arg2, %c0_i32_4 : i32
    %7 = arith.extui %6 : i1 to i32
    %c0_i32_5 = arith.constant 0 : i32
    %8 = arith.cmpi ne, %7, %c0_i32_5 : i32
    scf.if %8 {
      %c0_8 = arith.constant 0 : index
      %c0_9 = arith.constant 0 : index
      %12 = vector.load %arg8[%c0_8, %c0_9] : memref<16x128xf32, #tpu.memory_space<vmem>>, vector<16x128xf32>
      %13 = arith.addf %12, %2 : vector<16x128xf32>
      %c0_10 = arith.constant 0 : index
      %c0_11 = arith.constant 0 : index
      %14 = vector.load %arg8[%c0_10, %c0_11] : memref<16x128xf32, #tpu.memory_space<vmem>>, vector<16x128xf32>
      tpu.vector_store %arg8[%c0_10, %c0_11], %13 {strides = array<i32>} : memref<16x128xf32, #tpu.memory_space<vmem>>, vector<16x128xf32>,
    } else {
    }
    %c0_i32_6 = arith.constant 0 : i32
    %9 = arith.cmpi eq, %arg2, %c0_i32_6 : i32
    %10 = arith.extui %9 : i1 to i32
    %c0_i32_7 = arith.constant 0 : i32
    %11 = arith.cmpi ne, %10, %c0_i32_7 : i32
    scf.if %11 {
      %c0_8 = arith.constant 0 : index
      %c0_9 = arith.constant 0 : index
      %12 = vector.load %arg5[%c0_8, %c0_9] : memref<16x16xbf16, #tpu.memory_space<vmem>>, vector<16x16xbf16>
      %c0_10 = arith.constant 0 : index
      %c0_11 = arith.constant 0 : index
      %13 = vector.load %arg6[%c0_10, %c0_11] : memref<16x128xbf16, #tpu.memory_space<vmem>>, vector<16x128xbf16>
      %cst_12 = arith.constant dense<0.000000e+00> : vector<16x128xf32>
      %14 = tpu.matmul %12, %13, %cst_12 {dimension_numbers = #tpu.dot_dimension_numbers<[1], [0], [0], [1], [0, 0, 1, 1], [], []>} : vector<16x16xbf16>, vector<16x128xbf16>, vector<16x128xf32> -> vector<16x128xf32>
      %c0_13 = arith.constant 0 : index
      %c0_14 = arith.constant 0 : index
      %15 = vector.load %arg8[%c0_13, %c0_14] : memref<16x128xf32, #tpu.memory_space<vmem>>, vector<16x128xf32>
      %16 = arith.addf %15, %14 : vector<16x128xf32>
      %c0_15 = arith.constant 0 : index
      %c0_16 = arith.constant 0 : index
      %17 = vector.load %arg7[%c0_15, %c0_16] : memref<16x128xf32, #tpu.memory_space<vmem>>, vector<16x128xf32>
      tpu.vector_store %arg7[%c0_15, %c0_16], %16 {strides = array<i32>} : memref<16x128xf32, #tpu.memory_space<vmem>>, vector<16x128xf32>,
    } else {
    }
    return
  }
  func.func @transform_0(%arg0: i32, %arg1: i32, %arg2: i32) -> (i32, i32) {
    %c0_i32 = arith.constant 0 : i32
    return %arg0, %arg2 : i32, i32
  }
  func.func @transform_1(%arg0: i32, %arg1: i32, %arg2: i32) -> (i32, i32) {
    %c0_i32 = arith.constant 0 : i32
    return %arg2, %arg1 : i32, i32
  }
  func.func @transform_2(%arg0: i32, %arg1: i32, %arg2: i32) -> (i32, i32) {
    %c0_i32 = arith.constant 0 : i32
    %c0_i32_0 = arith.constant 0 : i32
    return %arg0, %c0_i32 : i32, i32
  }
  func.func @transform_3(%arg0: i32, %arg1: i32, %arg2: i32) -> (i32, i32) {
    %c0_i32 = arith.constant 0 : i32
    %c0_i32_0 = arith.constant 0 : i32
    return %c0_i32, %arg1 : i32, i32
  }
  func.func @transform_4(%arg0: i32, %arg1: i32, %arg2: i32) -> (i32, i32) {
    %c0_i32 = arith.constant 0 : i32
    return %arg0, %arg1 : i32, i32
  }
}

</mosaic_0001>

<bundles_post_ra>
// kernel: adaptive_lora_linear_fwd.1
= control target key start
LH: loop header
LB: loop body
LE: loop exit
PB: predicated region body
PF: predicated region fallthrough
CT: control target
= control target key end

     0   :  { %9 = vsyncpa [#allocation4], 0  ;;  %s432_s0 = inlined_call_operand.vmem [shape: bf16[16,128], index: 0, kind: input, shape index: {}]   ;;  %s433_s1 = inlined_call_operand.hbm [shape: bf16[128,128], index: 1, kind: input, shape index: {}]   ;;  %s434_s2 = inlined_call_operand.vmem [shape: bf16[16,16], index: 2, kind: input, shape index: {}]   ;;  %s435_s3 = inlined_call_operand.vmem [shape: bf16[16,128], index: 3, kind: input, shape index: {}]   ;;  %s436_s4 = inlined_call_operand.hbm [shape: f32[16,128], index: 4, kind: output, shape index: {}]  }
   0x1   :  { %10 = vsyncpa [#allocation5], 0  ;;  %s366_s15 = smov [#allocation3]   ;;  %s318_s19 = scalar_lea.hbm %s433_s1, 1024 }
   0x2   :  { %s18_s16 = sshll.u32 %s366_s15, 4  ;;  %p319_p0 = scmp.ne.s32.totalorder %s433_s1, %s318_s19  ;;  %s19_s16 = int_to_ptr.vmem [resolvable:$true] %s18_s16 }
   0x3   :  { %p322_p1 = scmp.lt.u32.totalorder %s318_s19, %s433_s1 }
   0x5   :  { %p324_p2 = pnand %p322_p1, %p319_p0 }
   0x7   :  { %327 = shalt.err (!%p324_p2)
}
   0x8   :  { %s328_s24 = scalar_lea.vmem %s19_s16, 1024  ;;  %p333_p4 = scmp.lt.s32.totalorder %s19_s16, %s19_s16 }
   0x9   :  { %p329_p3 = scmp.ne.s32.totalorder %s19_s16, %s328_s24  ;;  %p334_p5 = scmp.lt.s32.totalorder %s328_s24, %s328_s24 }
   0xb   :  { %p335_p6 = por %p334_p5, %p333_p4 }
   0xd   :  { %p336_p7 = pnand %p335_p6, %p329_p3 }
   0xf   :  { %339 = shalt.err (!%p336_p7)
}
  0x10   :  { %s367_s25 = smov 64   ;;  %s368_s26 = smov 4  }
  0x11   :  { %24 = dma.hbm_to_vmem [thread:$0]  %s433_s1, 1024, %s19_s16, [#allocation4], %s367_s25, %s367_s25, %s368_s26  }
  0x12   :  { %362 = dma.done.wait [#allocation4], 1024  }
  0x13   :  { %363 = vsyncadd [#allocation4], 4294966272  ;;  %v369_v0 = vmov 0.0   ;;  %vm370_vm0 = vmmov 0   ;;  %v307_v1 = vld [vmem:[#allocation3] sm:$0xff]   ;;  %v308_v2 = vld [vmem:[#allocation3 + $0x8] sm:$0xff]  }
  0x14   :  { %271 = vmatprep.subr.bf16.mxu1 %v369_v0  ;;  %291 = vmatprep.subr.bf16.mxu0 %v369_v0  ;;  %v309_v3 = vld [vmem:[#allocation3 + $0x10] sm:$0xff]   ;;  %v314_v4 = vld [vmem:[%s435_s3] sm:$0xff]   ;;  %vm180_vm1 = vcmask 130048   ;;  %v310_v6 = vld [vmem:[#allocation3 + $0x18] sm:$0xff]  }
  0x15   :  { %293 = vmatprep.mubr.msk.bf16.mxu0 %vm370_vm0, %v369_v0  ;;  %287 = vmatprep.mubr.msk.bf16.mxu1 %vm370_vm0, %v369_v0  ;;  %v316_v5 = vld [vmem:[%s434_s2] sm:$0xff]   ;;  %v312_v8 = vld [vmem:[#allocation3 + $0x28] sm:$0xff]   ;;  %v313_v9 = vld [vmem:[#allocation3 + $0x30] sm:$0xff]   ;;  %s371_s2 = smov [#allocation6]  }
  0x16   :  { %272 = vmatpush3.bf16.msra.mxu1 %v307_v1  ;;  %292 = vmatpush3.bf16.msra.mxu0 %v314_v4  ;;  %v311_v7 = vld [vmem:[#allocation3 + $0x20] sm:$0xff]   ;;  %v315_v10 = vld [vmem:[#allocation3 + $0x38] sm:$0xff]   ;;  %s236_s7 = sshll.u32 %s371_s2, 4  ;;  %s237_s7 = int_to_ptr.vmem [resolvable:$true] %s236_s7 }
  0x17   :  { %273 = vmatprep.subr.bf16.mxu1 %v369_v0  ;;  %v317_v11 = vld [vmem:[%s432_s0] sm:$0xff]   ;;  %s340_s8 = scalar_lea.vmem %s237_s7, 256  ;;  %p345_p9 = scmp.lt.s32.totalorder %s237_s7, %s237_s7 }
  0x18   :  { %p341_p8 = scmp.ne.s32.totalorder %s237_s7, %s340_s8  ;;  %p346_p10 = scmp.lt.s32.totalorder %s340_s8, %s340_s8 }
  0x19   :  { %294 = vmatmul.mubr.msk.bf16.vlgmr.msra.gmra.mrb[0].mxu0 %vm180_vm1, %v316_v5 }
  0x1a   :  { %274 = vmatpush3.bf16.msra.mxu1 %v308_v2  ;;  %p347_p11 = por %p346_p10, %p345_p9 }
  0x1b   :  { %275 = vmatprep.subr.bf16.mxu1 %v369_v0 }
  0x1c   :  { %p348_p12 = pnand %p347_p11, %p341_p8 }
  0x1e   :  { %276 = vmatpush3.bf16.msra.mxu1 %v309_v3 }
  0x1f   :  { %277 = vmatprep.subr.bf16.mxu1 %v369_v0 }
  0x22   :  { %278 = vmatpush3.bf16.msra.mxu1 %v310_v6 }
  0x23   :  { %279 = vmatprep.subr.bf16.mxu1 %v369_v0 }
  0x26   :  { %280 = vmatpush3.bf16.msra.mxu1 %v311_v7 }
  0x27   :  { %281 = vmatprep.subr.bf16.mxu1 %v369_v0 }
  0x2a   :  { %282 = vmatpush3.bf16.msra.mxu1 %v312_v8 }
  0x2b   :  { %283 = vmatprep.subr.bf16.mxu1 %v369_v0 }
  0x2e   :  { %284 = vmatpush3.bf16.msra.mxu1 %v313_v9 }
  0x2f   :  { %285 = vmatprep.subr.bf16.mxu1 %v369_v0 }
  0x32   :  { %286 = vmatpush3.bf16.msra.mxu1 %v315_v10 }
  0x35   :  { %288 = vmatmul.mubr.bf16.vlgmr.msra.gmra.mrb[0].mxu1 %v317_v11 }
  0xec   :  { %v218_v12 = vpop.f32.mrb[0].mxu0 }
  0xed   :  { %v295_v13 = vpop.f32.mrb[1].mxu0 }
  0xee   :  { %v221_v14 = vpop.f32.mrb[2].mxu0 }
  0xef   :  { %v296_v15 = vpop.f32.mrb[3].mxu0 }
 0x108   :  { %v139_v16 = vpop.f32.mrb[0].mxu1 }
 0x109   :  { %v227_v17 = vadd.f32 %v218_v12, %v139_v16  ;;  %v289_v18 = vpop.f32.mrb[1].mxu1 }
 0x10a   :  { %v142_v19 = vpop.f32.mrb[2].mxu1 }
 0x10b   :  { %229 = vst [vmem:[#allocation6] sm:$0xff] %v227_v17  ;;  %v228_v20 = vadd.f32 %v221_v14, %v142_v19  ;;  %v290_v21 = vpop.f32.mrb[3].mxu1 }
 0x10d   :  { %230 = vst [vmem:[#allocation6 + $0x8] sm:$0xff] %v228_v20 }
 0x10e   :  { %351 = shalt.err (!%p348_p12)
}
 0x10f   :  { %s352_s10 = scalar_lea.hbm %s436_s4, 256 }
 0x110   :  { %p353_p13 = scmp.ne.s32.totalorder %s436_s4, %s352_s10  ;;  %p356_p0 = scmp.lt.u32.totalorder %s352_s10, %s436_s4 }
 0x112   :  { %p358_p1 = pnand %p356_p0, %p353_p13 }
 0x114   :  { %361 = shalt.err (!%p358_p1)
}
 0x115   :  { %s372_s15 = smov 128   ;;  %s373_s16 = smov 8  }
 0x116   :  { %242 = dma.vmem_to_hbm [thread:$0]  %s237_s7, 256, %s436_s4, [#allocation5], %s372_s15, %s372_s15, %s373_s16  }
 0x117   :  { %364 = dma.done.wait [#allocation5], 256  }
 0x118   :  { %365 = vsyncadd [#allocation5], 4294967040 }
 0x119   :  { %246 = vsyncpa [#allocation4], 1 }
 0x11a   :  { %247 = vsyncpa [#allocation5], 1 }

</bundles_post_ra>
